<compile_context>
chip_gen: v7x
topology: tpu7x:2x2x1
jax: 0.10.0
libtpu: 0.0.40
codegen_flags: <defaults>
</compile_context>

<pallas_src>
import math

import jax
import jax.numpy as jnp
from jax import lax
from jax.experimental import pallas as pl
from jax.experimental.pallas import tpu as pltpu

# ----------------------------------------------------------------------------
# Config (mirrors EmotionInputEncoder.__init__ arguments, small sizes)
# ----------------------------------------------------------------------------
EMB_DIM = 32          # emb_dim
HIDDEN = 32           # hidden_size
NUM_LAYERS = 1        # num_layers (all layers fused in one pallas_call)
NUM_HEADS = 4         # num_heads
KEY_DEPTH = 32        # total_key_depth
VALUE_DEPTH = 32      # total_value_depth
FILTER = 64           # filter_size
EMO_INPUT = "self_att"

B = 2                 # batch
S = 8                 # source sequence length
S_EMO = 1             # emotion "sequence" length (expanded to S, as in torch)
BS = B * S            # whole batch processed as one slab

DK = KEY_DEPTH // NUM_HEADS
DV = VALUE_DEPTH // NUM_HEADS
QKV = 2 * KEY_DEPTH + VALUE_DEPTH                 # 96

# ---- packed parameter layout ------------------------------------------------
# Matrix slab W: (W_ROWS, 128). Matrices stacked along the sublane (row) axis,
# each at lane offset 0 with <=128 lanes; row offsets are multiples of 8, so no
# static slice crosses an (8,128) tile boundary.
W_LANES = 128
R_WTOP = 0                                        # (EMB_DIM, HIDDEN)
R_WBOT = EMB_DIM                                  # (EMB_DIM, HIDDEN)
R_LAYER0 = 2 * EMB_DIM
LR_WQKV = 0                                       # (HIDDEN, QKV)   scale folded in
LR_WO = HIDDEN                                    # (VALUE_DEPTH, HIDDEN)
LR_W1 = HIDDEN + VALUE_DEPTH                      # (HIDDEN, FILTER)
LR_W2 = HIDDEN + VALUE_DEPTH + HIDDEN             # (FILTER, HIDDEN)
LAYER_ROWS = HIDDEN + VALUE_DEPTH + HIDDEN + FILTER
W_ROWS = R_LAYER0 + NUM_LAYERS * LAYER_ROWS

# Vector slab V: (V_ROWS, V_COLS), one parameter vector per row.
VROW_TIMING = 0                                   # rows 0:BS -> timing, tiled per batch
VROW_LNF = BS                                     # final LN gamma / beta
VROW_LAYER0 = BS + 8                              # per layer: ln1g,ln1b,ln2g,ln2b,b2,b1
V_ROWS = VROW_LAYER0 + 6 * NUM_LAYERS
V_COLS = max(HIDDEN, FILTER)


# ----------------------------------------------------------------------------
# Kernel
# ----------------------------------------------------------------------------
def _moel_layer_norm(x, g, b, eps=1e-6):
    # MoEL common_layer.LayerNorm: gamma*(x-mean)/(std+eps)+beta, unbiased std.
    mu = jnp.mean(x, axis=-1, keepdims=True)
    d = x - mu
    var = jnp.sum(d * d, axis=-1, keepdims=True) * (1.0 / (x.shape[-1] - 1))
    inv = pl.reciprocal(jnp.sqrt(var) + eps, approx=False)   # EUP, not VALU divide
    return g * d * inv + b


def encoder_kernel(enc_ref, emo_ref, nmask_ref, w_ref, v_ref, o_ref):
    enc = enc_ref[...]                                 # (BS, EMB_DIM)
    emo = emo_ref[...]                                 # (BS, EMB_DIM), pre-expanded
    neg = nmask_ref[...]                               # (H*BS, BS) additive mask

    # --- global params (tile-aligned static slices of the packed slabs) ------
    w_top = w_ref[R_WTOP:R_WTOP + EMB_DIM, 0:HIDDEN]
    w_bot = w_ref[R_WBOT:R_WBOT + EMB_DIM, 0:HIDDEN]
    timing = v_ref[VROW_TIMING:VROW_TIMING + BS, 0:HIDDEN]         # (BS, HIDDEN)
    lnf_g = v_ref[VROW_LNF:VROW_LNF + 1, 0:HIDDEN]
    lnf_b = v_ref[VROW_LNF + 1:VROW_LNF + 2, 0:HIDDEN]

    # embedding_proj(concat([enc, emo_expanded], -1)) == enc@W_top + emo@W_bot
    # (bias-free), then add the sinusoidal timing signal (already batch-tiled).
    x = (jnp.dot(enc, w_top, preferred_element_type=jnp.float32)
         + jnp.dot(emo, w_bot, preferred_element_type=jnp.float32)
         + timing)

    for l in range(NUM_LAYERS):                        # static unroll, one launch
        rb = R_LAYER0 + l * LAYER_ROWS
        wqkv = w_ref[rb + LR_WQKV:rb + LR_WQKV + HIDDEN, 0:QKV]
        wo = w_ref[rb + LR_WO:rb + LR_WO + VALUE_DEPTH, 0:HIDDEN]
        w1 = w_ref[rb + LR_W1:rb + LR_W1 + HIDDEN, 0:FILTER]
        w2 = w_ref[rb + LR_W2:rb + LR_W2 + FILTER, 0:HIDDEN]
        vb = VROW_LAYER0 + 6 * l
        ln1_g = v_ref[vb + 0:vb + 1, 0:HIDDEN]
        ln1_b = v_ref[vb + 1:vb + 2, 0:HIDDEN]
        ln2_g = v_ref[vb + 2:vb + 3, 0:HIDDEN]
        ln2_b = v_ref[vb + 3:vb + 4, 0:HIDDEN]
        b2 = v_ref[vb + 4:vb + 5, 0:HIDDEN]
        b1 = v_ref[vb + 5:vb + 6, 0:FILTER]

        # ---- pre-norm multi-head self-attention (bias-free linears) ---------
        xn = _moel_layer_norm(x, ln1_g, ln1_b)
        qkv = jnp.dot(xn, wqkv, preferred_element_type=jnp.float32)   # (BS, 96)
        q = qkv[:, 0:KEY_DEPTH]                       # 1/sqrt(DK) folded into Wq
        k = qkv[:, KEY_DEPTH:2 * KEY_DEPTH]
        v = qkv[:, 2 * KEY_DEPTH:QKV]

        # Per-head scores stacked on the sublane axis -> ONE batched softmax.
        # lax.dot_general contracts the last dims (no explicit transpose / XLU).
        scores = jnp.concatenate(
            [lax.dot_general(q[:, h * DK:(h + 1) * DK], k[:, h * DK:(h + 1) * DK],
                             (((1,), (1,)), ((), ())),
                             preferred_element_type=jnp.float32)
             for h in range(NUM_HEADS)], axis=0)                      # (H*BS, BS)
        scores = scores + neg                         # key padding + cross-batch mask
        scores = scores - jnp.max(scores, axis=-1, keepdims=True)
        ex = jnp.exp(scores)
        att = ex * pl.reciprocal(jnp.sum(ex, axis=-1, keepdims=True), approx=True)
        ctx = jnp.concatenate(
            [jnp.dot(att[h * BS:(h + 1) * BS, :], v[:, h * DV:(h + 1) * DV],
                     preferred_element_type=jnp.float32)
             for h in range(NUM_HEADS)], axis=-1)                     # (BS, VALUE_DEPTH)
        x = x + jnp.dot(ctx, wo, preferred_element_type=jnp.float32)  # dropout == id

        # ---- pre-norm position-wise FFN --------------------------------------
        xn = _moel_layer_norm(x, ln2_g, ln2_b)
        f = jnp.maximum(jnp.dot(xn, w1, preferred_element_type=jnp.float32) + b1, 0.0)
        f = jnp.dot(f, w2, preferred_element_type=jnp.float32) + b2
        x = x + f

    y = _moel_layer_norm(x, lnf_g, lnf_b)              # final Encoder LayerNorm
    o_ref[...] = y.astype(o_ref.dtype)


# ----------------------------------------------------------------------------
# Wrapper (glue in plain JAX, hot path in ONE Pallas invocation — no grid)
# ----------------------------------------------------------------------------
def emotion_input_encoder(emotion, encoder_outputs, mask_src, w_packed, v_packed):
    if EMO_INPUT != "self_att":
        raise ValueError("Only the 'self_att' branch is implemented.")

    b, s, e = encoder_outputs.shape
    assert (b, s, e) == (B, S, EMB_DIM) and emotion.shape == (b, S_EMO, e)

    enc2d = encoder_outputs.reshape(b * s, e)
    # torch: emotion.expand([-1, S, -1]) — broadcast the single emotion row per batch.
    emo2d = jnp.broadcast_to(emotion, (b, s, e)).reshape(b * s, e)

    # Additive score mask, precomputed host-side:
    #   within batch: -1e18 on padded key columns (masked_fill semantics),
    #   cross-batch : -1e18 (keeps the batch-merged attention block-diagonal),
    #   tiled per head so the kernel does a single add.
    key_pad = mask_src[:, 0, :]                                   # (B, S) bool
    base = jnp.full((b * s, b * s), -1e18, dtype=jnp.float32)
    for bi in range(b):
        blk = jnp.where(key_pad[bi], jnp.float32(-1e18), jnp.float32(0.0))  # (S,)
        base = base.at[bi * s:(bi + 1) * s, bi * s:(bi + 1) * s].set(
            jnp.broadcast_to(blk, (s, s)))
    neg_mask = jnp.tile(base, (NUM_HEADS, 1))                      # (H*BS, BS)

    vmem = lambda: pl.BlockSpec(memory_space=pltpu.MemorySpace.VMEM)
    out2d = pl.pallas_call(
        encoder_kernel,
        out_shape=jax.ShapeDtypeStruct((b * s, HIDDEN), jnp.float32),
        in_specs=[vmem(), vmem(), vmem(), vmem(), vmem()],
        out_specs=vmem(),
    )(enc2d, emo2d, neg_mask, w_packed, v_packed)
    return out2d.reshape(b, s, HIDDEN)


# ----------------------------------------------------------------------------
# Parameter init + packing (synthetic; no checkpoint loading)
# ----------------------------------------------------------------------------
def gen_timing_signal(length, channels, min_ts=1.0, max_ts=1.0e4):
    position = jnp.arange(length, dtype=jnp.float32)
    num_ts = channels // 2
    log_inc = math.log(float(max_ts) / float(min_ts)) / max(num_ts - 1, 1)
    inv_ts = min_ts * jnp.exp(jnp.arange(num_ts, dtype=jnp.float32) * -log_inc)
    scaled = position[:, None] * inv_ts[None, :]
    return jnp.concatenate([jnp.sin(scaled), jnp.cos(scaled)], axis=1)   # (L, C)


def init_params(key):
    ks = jax.random.split(key, 2 + NUM_LAYERS)

    def dense(k, shape, scale=0.05):
        return jax.random.normal(k, shape, jnp.float32) * scale

    params = {
        "w_proj_top": dense(ks[0], (EMB_DIM, HIDDEN)),   # embedding_proj, enc half
        "w_proj_bot": dense(ks[1], (EMB_DIM, HIDDEN)),   # embedding_proj, emo half
        "lnf_g": jnp.ones((HIDDEN,), jnp.float32),
        "lnf_b": jnp.zeros((HIDDEN,), jnp.float32),
        "layers": [],
    }
    for l in range(NUM_LAYERS):
        kq, kk, kv, ko, k1, k2 = jax.random.split(ks[2 + l], 6)
        params["layers"].append({
            "wq": dense(kq, (HIDDEN, KEY_DEPTH)),
            "wk": dense(kk, (HIDDEN, KEY_DEPTH)),
            "wv": dense(kv, (HIDDEN, VALUE_DEPTH)),
            "wo": dense(ko, (VALUE_DEPTH, HIDDEN)),
            "w1": dense(k1, (HIDDEN, FILTER)),
            "b1": jnp.zeros((FILTER,), jnp.float32),
            "w2": dense(k2, (FILTER, HIDDEN)),
            "b2": jnp.zeros((HIDDEN,), jnp.float32),
            "ln1_g": jnp.ones((HIDDEN,), jnp.float32),
            "ln1_b": jnp.zeros((HIDDEN,), jnp.float32),
            "ln2_g": jnp.ones((HIDDEN,), jnp.float32),
            "ln2_b": jnp.zeros((HIDDEN,), jnp.float32),
        })
    return params


def pack_params(params, timing):
    """Pack all weights into 2 contiguous, vreg-tile-aligned slabs."""
    W = jnp.zeros((W_ROWS, W_LANES), jnp.float32)
    W = W.at[R_WTOP:R_WTOP + EMB_DIM, :HIDDEN].set(params["w_proj_top"])
    W = W.at[R_WBOT:R_WBOT + EMB_DIM, :HIDDEN].set(params["w_proj_bot"])

    V = jnp.zeros((V_ROWS, V_COLS), jnp.float32)
    V = V.at[VROW_TIMING:VROW_TIMING + BS, :HIDDEN].set(jnp.tile(timing, (B, 1)))
    V = V.at[VROW_LNF, :HIDDEN].set(params["lnf_g"])
    V = V.at[VROW_LNF + 1, :HIDDEN].set(params["lnf_b"])

    scale = float(DK) ** -0.5                         # fold 1/sqrt(DK) into Wq
    for l, lp in enumerate(params["layers"]):
        rb = R_LAYER0 + l * LAYER_ROWS
        wqkv = jnp.concatenate([lp["wq"] * scale, lp["wk"], lp["wv"]], axis=1)
        W = W.at[rb + LR_WQKV:rb + LR_WQKV + HIDDEN, :QKV].set(wqkv)
        W = W.at[rb + LR_WO:rb + LR_WO + VALUE_DEPTH, :HIDDEN].set(lp["wo"])
        W = W.at[rb + LR_W1:rb + LR_W1 + HIDDEN, :FILTER].set(lp["w1"])
        W = W.at[rb + LR_W2:rb + LR_W2 + FILTER, :HIDDEN].set(lp["w2"])
        vb = VROW_LAYER0 + 6 * l
        V = V.at[vb + 0, :HIDDEN].set(lp["ln1_g"])
        V = V.at[vb + 1, :HIDDEN].set(lp["ln1_b"])
        V = V.at[vb + 2, :HIDDEN].set(lp["ln2_g"])
        V = V.at[vb + 3, :HIDDEN].set(lp["ln2_b"])
        V = V.at[vb + 4, :HIDDEN].set(lp["b2"])
        V = V.at[vb + 5, :FILTER].set(lp["b1"])
    return W, V


# ----------------------------------------------------------------------------
# Main
# ----------------------------------------------------------------------------
if __name__ == "__main__":
    root = jax.random.PRNGKey(0)
    k_params, k_emo, k_enc = jax.random.split(root, 3)

    params = init_params(k_params)
    timing = gen_timing_signal(S, HIDDEN)
    w_packed, v_packed = pack_params(params, timing)

    emotion = jax.random.normal(k_emo, (B, S_EMO, EMB_DIM), jnp.float32)
    encoder_outputs = jax.random.normal(k_enc, (B, S, EMB_DIM), jnp.float32)

    # mask_src: True => padded position (masked), like (batch_seq == PAD_idx).unsqueeze(1)
    lengths = jnp.array([S, S - 2])                         # batch 1 has 2 padded tokens
    positions = jnp.arange(S)[None, :]                      # (1, S)
    mask_src = (positions >= lengths[:, None])[:, None, :]  # (B, 1, S), bool

    out = emotion_input_encoder(emotion, encoder_outputs, mask_src,
                                w_packed, v_packed)
    out = jax.block_until_ready(out)

    assert out.shape == (B, S, HIDDEN)
    assert bool(jnp.all(jnp.isfinite(out)))
    print("KERNEL_OK")
</pallas_src>

<mosaic_0001>
module attributes {stable_mosaic.version = 11 : i64} {
  func.func @encoder_kernel(%arg0: memref<16x32xf32, #tpu.memory_space<vmem>>, %arg1: memref<16x32xf32, #tpu.memory_space<vmem>>, %arg2: memref<64x16xf32, #tpu.memory_space<vmem>>, %arg3: memref<224x128xf32, #tpu.memory_space<vmem>>, %arg4: memref<30x64xf32, #tpu.memory_space<vmem>>, %arg5: memref<16x32xf32, #tpu.memory_space<vmem>>) attributes {dimension_semantics = [], scalar_prefetch = 0 : i64, scratch_operands = 0 : i64, tpu.core_type = #tpu.core_type<tc>} {
    %c0 = arith.constant 0 : index
    %c0_0 = arith.constant 0 : index
    %0 = vector.load %arg0[%c0, %c0_0] : memref<16x32xf32, #tpu.memory_space<vmem>>, vector<16x32xf32>
    %c0_1 = arith.constant 0 : index
    %c0_2 = arith.constant 0 : index
    %1 = vector.load %arg1[%c0_1, %c0_2] : memref<16x32xf32, #tpu.memory_space<vmem>>, vector<16x32xf32>
    %c0_3 = arith.constant 0 : index
    %c0_4 = arith.constant 0 : index
    %2 = vector.load %arg2[%c0_3, %c0_4] : memref<64x16xf32, #tpu.memory_space<vmem>>, vector<64x16xf32>
    %c0_5 = arith.constant 0 : index
    %c0_6 = arith.constant 0 : index
    %3 = vector.load %arg3[%c0_5, %c0_6] : memref<224x128xf32, #tpu.memory_space<vmem>>, vector<32x32xf32>
    %c32 = arith.constant 32 : index
    %c0_7 = arith.constant 0 : index
    %4 = vector.load %arg3[%c32, %c0_7] : memref<224x128xf32, #tpu.memory_space<vmem>>, vector<32x32xf32>
    %c0_8 = arith.constant 0 : index
    %c0_9 = arith.constant 0 : index
    %5 = vector.load %arg4[%c0_8, %c0_9] : memref<30x64xf32, #tpu.memory_space<vmem>>, vector<16x32xf32>
    %c16 = arith.constant 16 : index
    %c0_10 = arith.constant 0 : index
    %6 = vector.load %arg4[%c16, %c0_10] : memref<30x64xf32, #tpu.memory_space<vmem>>, vector<1x32xf32>
    %c17 = arith.constant 17 : index
    %c0_11 = arith.constant 0 : index
    %7 = vector.load %arg4[%c17, %c0_11] : memref<30x64xf32, #tpu.memory_space<vmem>>, vector<1x32xf32>
    %cst = arith.constant dense<0.000000e+00> : vector<16x32xf32>
    %8 = tpu.matmul %0, %3, %cst {dimension_numbers = #tpu.dot_dimension_numbers<[1], [0], [0], [1], [0, 0, 1, 1], [], []>} : vector<16x32xf32>, vector<32x32xf32>, vector<16x32xf32> -> vector<16x32xf32>
    %cst_12 = arith.constant dense<0.000000e+00> : vector<16x32xf32>
    %9 = tpu.matmul %1, %4, %cst_12 {dimension_numbers = #tpu.dot_dimension_numbers<[1], [0], [0], [1], [0, 0, 1, 1], [], []>} : vector<16x32xf32>, vector<32x32xf32>, vector<16x32xf32> -> vector<16x32xf32>
    %10 = arith.addf %8, %9 : vector<16x32xf32>
    %11 = arith.addf %10, %5 : vector<16x32xf32>
    %c64 = arith.constant 64 : index
    %c0_13 = arith.constant 0 : index
    %12 = vector.load %arg3[%c64, %c0_13] : memref<224x128xf32, #tpu.memory_space<vmem>>, vector<32x96xf32>
    %c96 = arith.constant 96 : index
    %c0_14 = arith.constant 0 : index
    %13 = vector.load %arg3[%c96, %c0_14] : memref<224x128xf32, #tpu.memory_space<vmem>>, vector<32x32xf32>
    %c128 = arith.constant 128 : index
    %c0_15 = arith.constant 0 : index
    %14 = vector.load %arg3[%c128, %c0_15] : memref<224x128xf32, #tpu.memory_space<vmem>>, vector<32x64xf32>
    %c160 = arith.constant 160 : index
    %c0_16 = arith.constant 0 : index
    %15 = vector.load %arg3[%c160, %c0_16] : memref<224x128xf32, #tpu.memory_space<vmem>>, vector<64x32xf32>
    %c24 = arith.constant 24 : index
    %c0_17 = arith.constant 0 : index
    %16 = vector.load %arg4[%c24, %c0_17] : memref<30x64xf32, #tpu.memory_space<vmem>>, vector<1x32xf32>
    %c25 = arith.constant 25 : index
    %c0_18 = arith.constant 0 : index
    %17 = vector.load %arg4[%c25, %c0_18] : memref<30x64xf32, #tpu.memory_space<vmem>>, vector<1x32xf32>
    %c26 = arith.constant 26 : index
    %c0_19 = arith.constant 0 : index
    %18 = vector.load %arg4[%c26, %c0_19] : memref<30x64xf32, #tpu.memory_space<vmem>>, vector<1x32xf32>
    %c27 = arith.constant 27 : index
    %c0_20 = arith.constant 0 : index
    %19 = vector.load %arg4[%c27, %c0_20] : memref<30x64xf32, #tpu.memory_space<vmem>>, vector<1x32xf32>
    %c28 = arith.constant 28 : index
    %c0_21 = arith.constant 0 : index
    %20 = vector.load %arg4[%c28, %c0_21] : memref<30x64xf32, #tpu.memory_space<vmem>>, vector<1x32xf32>
    %c29 = arith.constant 29 : index
    %c0_22 = arith.constant 0 : index
    %21 = vector.load %arg4[%c29, %c0_22] : memref<30x64xf32, #tpu.memory_space<vmem>>, vector<1x64xf32>
    %cst_23 = arith.constant dense<0.000000e+00> : vector<16xf32>
    %22 = vector.multi_reduction <add>, %11, %cst_23 [1] : vector<16x32xf32> to vector<16xf32>
    %23 = vector.shape_cast %22 : vector<16xf32> to vector<16x1xf32>
    %cst_24 = arith.constant 3.200000e+01 : f32
    %24 = vector.broadcast %cst_24 : f32 to vector<16x1xf32>
    %25 = arith.divf %23, %24 : vector<16x1xf32>
    %26 = vector.broadcast %25 : vector<16x1xf32> to vector<16x32xf32>
    %27 = arith.subf %11, %26 : vector<16x32xf32>
    %28 = arith.mulf %27, %27 : vector<16x32xf32>
    %cst_25 = arith.constant dense<0.000000e+00> : vector<16xf32>
    %29 = vector.multi_reduction <add>, %28, %cst_25 [1] : vector<16x32xf32> to vector<16xf32>
    %30 = vector.shape_cast %29 : vector<16xf32> to vector<16x1xf32>
    %cst_26 = arith.constant 0.0322580636 : f32
    %31 = vector.broadcast %cst_26 : f32 to vector<16x1xf32>
    %32 = arith.mulf %30, %31 : vector<16x1xf32>
    %33 = math.sqrt %32 : vector<16x1xf32>
    %cst_27 = arith.constant 9.99999997E-7 : f32
    %34 = vector.broadcast %cst_27 : f32 to vector<16x1xf32>
    %35 = arith.addf %33, %34 : vector<16x1xf32>
    %36 = tpu.reciprocal %35 : vector<16x1xf32> -> vector<16x1xf32>
    %37 = vector.broadcast %16 : vector<1x32xf32> to vector<16x32xf32>
    %38 = arith.mulf %37, %27 : vector<16x32xf32>
    %39 = vector.broadcast %36 : vector<16x1xf32> to vector<16x32xf32>
    %40 = arith.mulf %38, %39 : vector<16x32xf32>
    %41 = vector.broadcast %17 : vector<1x32xf32> to vector<16x32xf32>
    %42 = arith.addf %40, %41 : vector<16x32xf32>
    %cst_28 = arith.constant dense<0.000000e+00> : vector<16x96xf32>
    %43 = tpu.matmul %42, %12, %cst_28 {dimension_numbers = #tpu.dot_dimension_numbers<[1], [0], [0], [1], [0, 0, 1, 1], [], []>} : vector<16x32xf32>, vector<32x96xf32>, vector<16x96xf32> -> vector<16x96xf32>
    %44 = vector.extract_strided_slice %43 {offsets = [0, 0], sizes = [16, 32], strides = [1, 1]} : vector<16x96xf32> to vector<16x32xf32>
    %45 = vector.extract_strided_slice %43 {offsets = [0, 32], sizes = [16, 32], strides = [1, 1]} : vector<16x96xf32> to vector<16x32xf32>
    %46 = vector.extract_strided_slice %43 {offsets = [0, 64], sizes = [16, 32], strides = [1, 1]} : vector<16x96xf32> to vector<16x32xf32>
    %47 = vector.extract_strided_slice %44 {offsets = [0, 0], sizes = [16, 8], strides = [1, 1]} : vector<16x32xf32> to vector<16x8xf32>
    %48 = vector.extract_strided_slice %45 {offsets = [0, 0], sizes = [16, 8], strides = [1, 1]} : vector<16x32xf32> to vector<16x8xf32>
    %cst_29 = arith.constant dense<0.000000e+00> : vector<16x16xf32>
    %49 = tpu.matmul %47, %48, %cst_29 {dimension_numbers = #tpu.dot_dimension_numbers<[1], [1], [0], [0], [0, 0, 1, 0], [], []>} : vector<16x8xf32>, vector<16x8xf32>, vector<16x16xf32> -> vector<16x16xf32>
    %50 = vector.extract_strided_slice %44 {offsets = [0, 8], sizes = [16, 8], strides = [1, 1]} : vector<16x32xf32> to vector<16x8xf32>
    %51 = vector.extract_strided_slice %45 {offsets = [0, 8], sizes = [16, 8], strides = [1, 1]} : vector<16x32xf32> to vector<16x8xf32>
    %cst_30 = arith.constant dense<0.000000e+00> : vector<16x16xf32>
    %52 = tpu.matmul %50, %51, %cst_30 {dimension_numbers = #tpu.dot_dimension_numbers<[1], [1], [0], [0], [0, 0, 1, 0], [], []>} : vector<16x8xf32>, vector<16x8xf32>, vector<16x16xf32> -> vector<16x16xf32>
    %53 = vector.extract_strided_slice %44 {offsets = [0, 16], sizes = [16, 8], strides = [1, 1]} : vector<16x32xf32> to vector<16x8xf32>
    %54 = vector.extract_strided_slice %45 {offsets = [0, 16], sizes = [16, 8], strides = [1, 1]} : vector<16x32xf32> to vector<16x8xf32>
    %cst_31 = arith.constant dense<0.000000e+00> : vector<16x16xf32>
    %55 = tpu.matmul %53, %54, %cst_31 {dimension_numbers = #tpu.dot_dimension_numbers<[1], [1], [0], [0], [0, 0, 1, 0], [], []>} : vector<16x8xf32>, vector<16x8xf32>, vector<16x16xf32> -> vector<16x16xf32>
    %56 = vector.extract_strided_slice %44 {offsets = [0, 24], sizes = [16, 8], strides = [1, 1]} : vector<16x32xf32> to vector<16x8xf32>
    %57 = vector.extract_strided_slice %45 {offsets = [0, 24], sizes = [16, 8], strides = [1, 1]} : vector<16x32xf32> to vector<16x8xf32>
    %cst_32 = arith.constant dense<0.000000e+00> : vector<16x16xf32>
    %58 = tpu.matmul %56, %57, %cst_32 {dimension_numbers = #tpu.dot_dimension_numbers<[1], [1], [0], [0], [0, 0, 1, 0], [], []>} : vector<16x8xf32>, vector<16x8xf32>, vector<16x16xf32> -> vector<16x16xf32>
    %59 = tpu.concatenate %49, %52, %55, %58 in 0 : vector<16x16xf32>, vector<16x16xf32>, vector<16x16xf32>, vector<16x16xf32> -> vector<64x16xf32>
    %60 = arith.addf %59, %2 : vector<64x16xf32>
    %cst_33 = arith.constant dense<0xFF800000> : vector<64xf32>
    %61 = vector.multi_reduction <maximumf>, %60, %cst_33 [1] : vector<64x16xf32> to vector<64xf32>
    %62 = vector.shape_cast %61 : vector<64xf32> to vector<64x1xf32>
    %63 = vector.broadcast %62 : vector<64x1xf32> to vector<64x16xf32>
    %64 = arith.subf %60, %63 : vector<64x16xf32>
    %65 = math.exp %64 : vector<64x16xf32>
    %cst_34 = arith.constant dense<0.000000e+00> : vector<64xf32>
    %66 = vector.multi_reduction <add>, %65, %cst_34 [1] : vector<64x16xf32> to vector<64xf32>
    %67 = vector.shape_cast %66 : vector<64xf32> to vector<64x1xf32>
    %68 = tpu.reciprocal %67 {approx = true} : vector<64x1xf32> -> vector<64x1xf32>
    %69 = vector.broadcast %68 : vector<64x1xf32> to vector<64x16xf32>
    %70 = arith.mulf %65, %69 : vector<64x16xf32>
    %71 = vector.extract_strided_slice %70 {offsets = [0, 0], sizes = [16, 16], strides = [1, 1]} : vector<64x16xf32> to vector<16x16xf32>
    %72 = vector.extract_strided_slice %46 {offsets = [0, 0], sizes = [16, 8], strides = [1, 1]} : vector<16x32xf32> to vector<16x8xf32>
    %cst_35 = arith.constant dense<0.000000e+00> : vector<16x8xf32>
    %73 = tpu.matmul %71, %72, %cst_35 {dimension_numbers = #tpu.dot_dimension_numbers<[1], [0], [0], [1], [0, 0, 1, 1], [], []>} : vector<16x16xf32>, vector<16x8xf32>, vector<16x8xf32> -> vector<16x8xf32>
    %74 = vector.extract_strided_slice %70 {offsets = [16, 0], sizes = [16, 16], strides = [1, 1]} : vector<64x16xf32> to vector<16x16xf32>
    %75 = vector.extract_strided_slice %46 {offsets = [0, 8], sizes = [16, 8], strides = [1, 1]} : vector<16x32xf32> to vector<16x8xf32>
    %cst_36 = arith.constant dense<0.000000e+00> : vector<16x8xf32>
    %76 = tpu.matmul %74, %75, %cst_36 {dimension_numbers = #tpu.dot_dimension_numbers<[1], [0], [0], [1], [0, 0, 1, 1], [], []>} : vector<16x16xf32>, vector<16x8xf32>, vector<16x8xf32> -> vector<16x8xf32>
    %77 = vector.extract_strided_slice %70 {offsets = [32, 0], sizes = [16, 16], strides = [1, 1]} : vector<64x16xf32> to vector<16x16xf32>
    %78 = vector.extract_strided_slice %46 {offsets = [0, 16], sizes = [16, 8], strides = [1, 1]} : vector<16x32xf32> to vector<16x8xf32>
    %cst_37 = arith.constant dense<0.000000e+00> : vector<16x8xf32>
    %79 = tpu.matmul %77, %78, %cst_37 {dimension_numbers = #tpu.dot_dimension_numbers<[1], [0], [0], [1], [0, 0, 1, 1], [], []>} : vector<16x16xf32>, vector<16x8xf32>, vector<16x8xf32> -> vector<16x8xf32>
    %80 = vector.extract_strided_slice %70 {offsets = [48, 0], sizes = [16, 16], strides = [1, 1]} : vector<64x16xf32> to vector<16x16xf32>
    %81 = vector.extract_strided_slice %46 {offsets = [0, 24], sizes = [16, 8], strides = [1, 1]} : vector<16x32xf32> to vector<16x8xf32>
    %cst_38 = arith.constant dense<0.000000e+00> : vector<16x8xf32>
    %82 = tpu.matmul %80, %81, %cst_38 {dimension_numbers = #tpu.dot_dimension_numbers<[1], [0], [0], [1], [0, 0, 1, 1], [], []>} : vector<16x16xf32>, vector<16x8xf32>, vector<16x8xf32> -> vector<16x8xf32>
    %83 = tpu.concatenate %73, %76, %79, %82 in 1 : vector<16x8xf32>, vector<16x8xf32>, vector<16x8xf32>, vector<16x8xf32> -> vector<16x32xf32>
    %cst_39 = arith.constant dense<0.000000e+00> : vector<16x32xf32>
    %84 = tpu.matmul %83, %13, %cst_39 {dimension_numbers = #tpu.dot_dimension_numbers<[1], [0], [0], [1], [0, 0, 1, 1], [], []>} : vector<16x32xf32>, vector<32x32xf32>, vector<16x32xf32> -> vector<16x32xf32>
    %85 = arith.addf %11, %84 : vector<16x32xf32>
    %cst_40 = arith.constant dense<0.000000e+00> : vector<16xf32>
    %86 = vector.multi_reduction <add>, %85, %cst_40 [1] : vector<16x32xf32> to vector<16xf32>
    %87 = vector.shape_cast %86 : vector<16xf32> to vector<16x1xf32>
    %cst_41 = arith.constant 3.200000e+01 : f32
    %88 = vector.broadcast %cst_41 : f32 to vector<16x1xf32>
    %89 = arith.divf %87, %88 : vector<16x1xf32>
    %90 = vector.broadcast %89 : vector<16x1xf32> to vector<16x32xf32>
    %91 = arith.subf %85, %90 : vector<16x32xf32>
    %92 = arith.mulf %91, %91 : vector<16x32xf32>
    %cst_42 = arith.constant dense<0.000000e+00> : vector<16xf32>
    %93 = vector.multi_reduction <add>, %92, %cst_42 [1] : vector<16x32xf32> to vector<16xf32>
    %94 = vector.shape_cast %93 : vector<16xf32> to vector<16x1xf32>
    %cst_43 = arith.constant 0.0322580636 : f32
    %95 = vector.broadcast %cst_43 : f32 to vector<16x1xf32>
    %96 = arith.mulf %94, %95 : vector<16x1xf32>
    %97 = math.sqrt %96 : vector<16x1xf32>
    %cst_44 = arith.constant 9.99999997E-7 : f32
    %98 = vector.broadcast %cst_44 : f32 to vector<16x1xf32>
    %99 = arith.addf %97, %98 : vector<16x1xf32>
    %100 = tpu.reciprocal %99 : vector<16x1xf32> -> vector<16x1xf32>
    %101 = vector.broadcast %18 : vector<1x32xf32> to vector<16x32xf32>
    %102 = arith.mulf %101, %91 : vector<16x32xf32>
    %103 = vector.broadcast %100 : vector<16x1xf32> to vector<16x32xf32>
    %104 = arith.mulf %102, %103 : vector<16x32xf32>
    %105 = vector.broadcast %19 : vector<1x32xf32> to vector<16x32xf32>
    %106 = arith.addf %104, %105 : vector<16x32xf32>
    %cst_45 = arith.constant dense<0.000000e+00> : vector<16x64xf32>
    %107 = tpu.matmul %106, %14, %cst_45 {dimension_numbers = #tpu.dot_dimension_numbers<[1], [0], [0], [1], [0, 0, 1, 1], [], []>} : vector<16x32xf32>, vector<32x64xf32>, vector<16x64xf32> -> vector<16x64xf32>
    %108 = vector.broadcast %21 : vector<1x64xf32> to vector<16x64xf32>
    %109 = arith.addf %107, %108 : vector<16x64xf32>
    %cst_46 = arith.constant 0.000000e+00 : f32
    %110 = vector.broadcast %cst_46 : f32 to vector<16x64xf32>
    %111 = arith.maximumf %109, %110 : vector<16x64xf32>
    %cst_47 = arith.constant dense<0.000000e+00> : vector<16x32xf32>
    %112 = tpu.matmul %111, %15, %cst_47 {dimension_numbers = #tpu.dot_dimension_numbers<[1], [0], [0], [1], [0, 0, 1, 1], [], []>} : vector<16x64xf32>, vector<64x32xf32>, vector<16x32xf32> -> vector<16x32xf32>
    %113 = vector.broadcast %20 : vector<1x32xf32> to vector<16x32xf32>
    %114 = arith.addf %112, %113 : vector<16x32xf32>
    %115 = arith.addf %85, %114 : vector<16x32xf32>
    %cst_48 = arith.constant dense<0.000000e+00> : vector<16xf32>
    %116 = vector.multi_reduction <add>, %115, %cst_48 [1] : vector<16x32xf32> to vector<16xf32>
    %117 = vector.shape_cast %116 : vector<16xf32> to vector<16x1xf32>
    %cst_49 = arith.constant 3.200000e+01 : f32
    %118 = vector.broadcast %cst_49 : f32 to vector<16x1xf32>
    %119 = arith.divf %117, %118 : vector<16x1xf32>
    %120 = vector.broadcast %119 : vector<16x1xf32> to vector<16x32xf32>
    %121 = arith.subf %115, %120 : vector<16x32xf32>
    %122 = arith.mulf %121, %121 : vector<16x32xf32>
    %cst_50 = arith.constant dense<0.000000e+00> : vector<16xf32>
    %123 = vector.multi_reduction <add>, %122, %cst_50 [1] : vector<16x32xf32> to vector<16xf32>
    %124 = vector.shape_cast %123 : vector<16xf32> to vector<16x1xf32>
    %cst_51 = arith.constant 0.0322580636 : f32
    %125 = vector.broadcast %cst_51 : f32 to vector<16x1xf32>
    %126 = arith.mulf %124, %125 : vector<16x1xf32>
    %127 = math.sqrt %126 : vector<16x1xf32>
    %cst_52 = arith.constant 9.99999997E-7 : f32
    %128 = vector.broadcast %cst_52 : f32 to vector<16x1xf32>
    %129 = arith.addf %127, %128 : vector<16x1xf32>
    %130 = tpu.reciprocal %129 : vector<16x1xf32> -> vector<16x1xf32>
    %131 = vector.broadcast %6 : vector<1x32xf32> to vector<16x32xf32>
    %132 = arith.mulf %131, %121 : vector<16x32xf32>
    %133 = vector.broadcast %130 : vector<16x1xf32> to vector<16x32xf32>
    %134 = arith.mulf %132, %133 : vector<16x32xf32>
    %135 = vector.broadcast %7 : vector<1x32xf32> to vector<16x32xf32>
    %136 = arith.addf %134, %135 : vector<16x32xf32>
    %c0_53 = arith.constant 0 : index
    %c0_54 = arith.constant 0 : index
    %137 = vector.load %arg5[%c0_53, %c0_54] : memref<16x32xf32, #tpu.memory_space<vmem>>, vector<16x32xf32>
    tpu.vector_store %arg5[%c0_53, %c0_54], %136 {strides = array<i32>} : memref<16x32xf32, #tpu.memory_space<vmem>>, vector<16x32xf32>,
    return
  }
}

</mosaic_0001>

<bundles_post_ra>
// kernel: tpu_custom_call.1
= control target key start
LH: loop header
LB: loop body
LE: loop exit
PB: predicated region body
PF: predicated region fallthrough
CT: control target
= control target key end

     0   :  { %10 = vsyncpa [#allocation3], 0  ;;  %s2390_s0 = inlined_call_operand.vmem [shape: f32[16,32], index: 0, kind: input, shape index: {}]   ;;  %s2391_s1 = inlined_call_operand.vmem [shape: f32[16,32], index: 1, kind: input, shape index: {}]   ;;  %s2392_s2 = inlined_call_operand.vmem [shape: f32[64,16], index: 2, kind: input, shape index: {}]   ;;  %s2393_s3 = inlined_call_operand.hbm [shape: f32[224,128], index: 3, kind: input, shape index: {}]   ;;  %s2394_s4 = inlined_call_operand.vmem [shape: f32[30,64], index: 4, kind: input, shape index: {}]   ;;  %s2395_s5 = inlined_call_operand.hbm [shape: f32[16,32], index: 5, kind: output, shape index: {}]  }
   0x1   :  { %11 = vsyncpa [#allocation4], 0  ;;  %s2109_s18 = smov [#allocation2]   ;;  %s2061_s22 = scalar_lea.hbm %s2393_s3, 3584 }
   0x2   :  { %s23_s19 = sshll.u32 %s2109_s18, 4  ;;  %p2062_p0 = scmp.ne.s32.totalorder %s2393_s3, %s2061_s22  ;;  %s24_s19 = int_to_ptr.vmem [resolvable:$true] %s23_s19 }
   0x3   :  { %p2065_p1 = scmp.lt.u32.totalorder %s2061_s22, %s2393_s3 }
   0x5   :  { %p2067_p2 = pnand %p2065_p1, %p2062_p0 }
   0x7   :  { %2070 = shalt.err (!%p2067_p2)
}
   0x8   :  { %s2071_s27 = scalar_lea.vmem %s24_s19, 3584  ;;  %p2076_p4 = scmp.lt.s32.totalorder %s24_s19, %s24_s19 }
   0x9   :  { %p2072_p3 = scmp.ne.s32.totalorder %s24_s19, %s2071_s27  ;;  %p2077_p5 = scmp.lt.s32.totalorder %s2071_s27, %s2071_s27 }
   0xb   :  { %p2078_p6 = por %p2077_p5, %p2076_p4 }
   0xd   :  { %p2079_p7 = pnand %p2078_p6, %p2072_p3 }
   0xf   :  { %2082 = shalt.err (!%p2079_p7)
}
  0x10   :  { %s2110_s28 = smov 128   ;;  %s2111_s29 = smov 8  }
  0x11   :  { %29 = dma.hbm_to_vmem [thread:$0]  %s2393_s3, 3584, %s24_s19, [#allocation3], %s2110_s28, %s2110_s28, %s2111_s29  }
  0x12   :  { %2105 = dma.done.wait [#allocation3], 3584  }
  0x13   :  { %2106 = vsyncadd [#allocation3], 4294963712  ;;  %v51_v0 = vld [vmem:[#allocation2 + $0x20] sm:$0xff]  ;;  %v52_v1 = vld [vmem:[#allocation2 + $0x28] sm:$0xff]  ;;  %vm59_vm0 = vcmask 261120   ;;  %vm390_vm5 = vcmask 64512  }
  0x14   :  { %v47_v2 = vld [vmem:[#allocation2] sm:$0xff]  ;;  %v1850_v3 = vpack.c.bf16 %v52_v1, %v51_v0  ;;  %v48_v4 = vld [vmem:[#allocation2 + $0x8] sm:$0xff]  ;;  %v53_v5 = vld [vmem:[#allocation2 + $0x30] sm:$0xff]  ;;  %s2112_s20 = smov 88   ;;  %s2113_s21 = smov 96   ;;  %vm755_vm7 = vcmask 130048  }
  0x15   :  { %v54_v6 = vld [vmem:[#allocation2 + $0x38] sm:$0xff]  ;;  %v1858_v7 = vpack.c.bf16 %v48_v4, %v47_v2  ;;  %v49_v9 = vld [vmem:[#allocation2 + $0x10] sm:$0xff]  ;;  %v37_v11 = vld [vmem:[%s2391_s1] sm:$0xff]  ;;  %s2114_s22 = smov 80   ;;  %s2115_s23 = smov 120   ;;  %vm1220_vm8 = vcmask 195584  }
  0x16   :  { %v1854_v8 = vpack.c.bf16 %v54_v6, %v53_v5  ;;  %v50_v10 = vld [vmem:[#allocation2 + $0x18] sm:$0xff]  ;;  %1851 = vmatprep.subr.bf16.mxu1 %v1850_v3  ;;  %1728 = vmatprep.mubr.msk.f32.mxu1 %vm59_vm0, %v37_v11  ;;  %v35_v13 = vld [vmem:[%s2390_s0] sm:$0xff]  ;;  %v38_v14 = vld [vmem:[%s2391_s1 + $0x8] sm:$0xff]  ;;  %s2116_s24 = smov 72   ;;  %s2117_s25 = smov 112   ;;  %vm1449_vm13 = vcmask 523264  }
  0x17   :  { %v1862_v12 = vpack.c.bf16 %v50_v10, %v49_v9  ;;  %1859 = vmatprep.subr.bf16.mxu0 %v1858_v7  ;;  %1853 = vmatpush3.bf16.msra.mxu1 %v1850_v3  ;;  %v36_v15 = vld [vmem:[%s2390_s0 + $0x8] sm:$0xff]  ;;  %v55_v20 = vld [vmem:[%s2394_s4] sm:$0xff]  ;;  %v226_v40 = vld [vmem:[#allocation2 + $0x50] sm:$0xff]  ;;  %s2118_s26 = smov 104   ;;  %s2120_s17 = smov 48  }
  0x18   :  { %1861 = vmatpush3.bf16.msra.mxu0 %v1858_v7  ;;  %1855 = vmatprep.subr.bf16.mxu1 %v1854_v8  ;;  %v56_v23 = vld [vmem:[%s2394_s4 + $0x8] sm:$0xff]  ;;  %v224_v38 = vld [vmem:[#allocation2 + $0x40] sm:$0xff]  ;;  %v227_v42 = vld [vmem:[#allocation2 + $0x58] sm:$0xff]  ;;  %s2121_s18 = smov 40   ;;  %s2122_s19 = smov 64  }
  0x19   :  { %1863 = vmatprep.subr.bf16.mxu0 %v1862_v12  ;;  %1739 = vmatprep.mubr.msk.f32.mxu0 %vm59_vm0, %v35_v13  ;;  %v225_v39 = vld [vmem:[#allocation2 + $0x48] sm:$0xff]  ;;  %v1870_v43 = vpack.c.bf16 %v227_v42, %v226_v40  ;;  %v1608_v60 = vld [vmem:[%s2394_s4 + $0x18] ss:$0 sm:$0xff]  ;;  %v1609_v63 = vld [vmem:[%s2394_s4 + $0x19] ss:$0 sm:$0xff]  ;;  %s2125_s10 = smov [#allocation5]  }
  0x1a   :  { %v1866_v41 = vpack.c.bf16 %v225_v39, %v224_v38  ;;  %vm2222_vm6 = vmpackc.low %vm390_vm5, %vm390_vm5  ;;  %v39_v39 = vld [vmem:[%s2392_s2] sm:$0xff]  ;;  %s1592_s11 = sshll.u32 %s2125_s10, 4  ;;  %s1593_s11 = int_to_ptr.vmem [resolvable:$true] %s1592_s11 }
  0x1b   :  { %1857 = vmatpush3.bf16.msra.mxu1 %v1854_v8  ;;  %s2083_s12 = scalar_lea.vmem %s1593_s11, 256  ;;  %p2088_p9 = scmp.lt.s32.totalorder %s1593_s11, %s1593_s11 }
  0x1c   :  { %1865 = vmatpush3.bf16.msra.mxu0 %v1862_v12  ;;  %1867 = vmatprep.subr.bf16.mxu1 %v1866_v41  ;;  %p2084_p8 = scmp.ne.s32.totalorder %s1593_s11, %s2083_s12  ;;  %p2089_p10 = scmp.lt.s32.totalorder %s2083_s12, %s2083_s12 }
  0x1e   :  { %1729 = vmatmul.mubr.msk.f32.vlgmr.msra.gmra.mrb[0].mxu1 %vm59_vm0, %v38_v14  ;;  %p2090_p11 = por %p2089_p10, %p2088_p9 }
  0x1f   :  { %1740 = vmatmul.mubr.msk.f32.vlgmr.msra.gmra.mrb[0].mxu0 %vm59_vm0, %v36_v15  ;;  %1869 = vmatpush3.bf16.msra.mxu1 %v1866_v41 }
  0x20   :  { %1871 = vmatprep.subr.bf16.mxu1 %v1870_v43  ;;  %p2091_p12 = pnand %p2090_p11, %p2084_p8 }
  0x23   :  { %1873 = vmatpush3.bf16.msra.mxu1 %v1870_v43 }
  0xf1   :  { %v1730_v16 = vpop.f32.mrb[0].mxu1 }
  0xf2   :  { %v1741_v17 = vpop.f32.mrb[0].mxu0  ;;  %v132_v18 = vpop.f32.mrb[1].mxu1 }
  0xf3   :  { %v219_v19 = vadd.f32 %v1741_v17, %v1730_v16  ;;  %v213_v21 = vpop.f32.mrb[1].mxu0 }
  0xf4   :  { %v214_v22 = vadd.f32 %v213_v21, %v132_v18 }
  0xf5   :  { %v2195_v25 = vadd.f32 %v219_v19, %v56_v23 }
  0xf6   :  { %v2193_v24 = vadd.f32 %v214_v22, %v55_v20 }
  0xf7   :  { %v253_v27 = vsel %vm59_vm0, %v2195_v25, 0.0 }
  0xf8   :  { %v250_v26 = vsel %vm59_vm0, %v2193_v24, 0.0 }
  0xf9   :  { %251 = vadd.xlane.f32.xlu0 %v250_v26 }
  0xfd   :  { %254 = vadd.xlane.f32.xlu0 %v253_v27 }
 0x186   :  { %v252_v28 = vpop.xlane.xlu0 %251 }
 0x187   :  { %v257_v29 = vmul.f32 0.03125, %v252_v28 }
 0x189   :  { %v259_v30 = vsub.f32 %v2193_v24, %v257_v29 }
 0x18a   :  { %v255_v31 = vpop.xlane.xlu0 %254 }
 0x18b   :  { %v258_v32 = vmul.f32 0.03125, %v255_v31  ;;  %v261_v33 = vmul.f32 %v259_v30, %v259_v30  ;;  %v293_v61 = vmul.f32 %v1608_v60, %v259_v30 }
 0x18d   :  { %v260_v34 = vsub.f32 %v2195_v25, %v258_v32  ;;  %v263_v35 = vsel %vm59_vm0, %v261_v33, 0.0 }
 0x18e   :  { %264 = vadd.xlane.f32.xlu1 %v263_v35  ;;  %v42_v35 = vld [vmem:[%s2392_s2 + $0x18] sm:$0xff] }
 0x18f   :  { %v262_v36 = vmul.f32 %v260_v34, %v260_v34  ;;  %v294_v1 = vmul.f32 %v1608_v60, %v260_v34  ;;  %v40_v34 = vld [vmem:[%s2392_s2 + $0x8] sm:$0xff] }
 0x191   :  { %v266_v37 = vsel %vm59_vm0, %v262_v36, 0.0 }
 0x192   :  { %267 = vadd.xlane.f32.xlu1 %v266_v37 }
 0x21b   :  { %v265_v44 = vpop.xlane.xlu1 %264 }
 0x21c   :  { %v269_v45 = vmul.f32 0.032258064, %v265_v44 }
 0x21e   :  { %2005 = vrsqrt.f32 %v269_v45  ;;  %vm273_vm1 = vcmp.eq.f32.partialorder %v269_v45, inf  ;;  %v276_v50 = vand.u32 2147483648, %v269_v45  ;;  %vm275_vm2 = vcmp.eq.f32.partialorder %v269_v45, 0.0 }
 0x21f   :  { %v268_v46 = vpop.xlane.xlu1 %267 }
 0x220   :  { %v270_v47 = vmul.f32 0.032258064, %v268_v46  ;;  %v41_v46 = vld [vmem:[%s2392_s2 + $0x10] sm:$0xff] }
 0x222   :  { %2007 = vrsqrt.f32 %v270_v47  ;;  %vm280_vm3 = vcmp.eq.f32.partialorder %v270_v47, inf  ;;  %v283_v56 = vand.u32 2147483648, %v270_v47  ;;  %vm282_vm4 = vcmp.eq.f32.partialorder %v270_v47, 0.0 }
 0x228   :  { %v2006_v48 = vpop.eup %2005 }
 0x229   :  { %v272_v49 = vmul.f32 %v2006_v48, %v269_v45 }
 0x22b   :  { %v274_v51 = vsel %vm273_vm1, %v269_v45, %v272_v49  ;;  %v46_v49 = vld [vmem:[%s2392_s2 + $0x38] sm:$0xff] }
 0x22c   :  { %v2008_v52 = vpop.eup %2007  ;;  %v277_v53 = vsel %vm275_vm2, %v276_v50, %v274_v51 }
 0x22d   :  { %v279_v54 = vmul.f32 %v2008_v52, %v270_v47  ;;  %v285_v55 = vadd.f32 1e-06, %v277_v53 }
 0x22f   :  { %v281_v57 = vsel %vm280_vm3, %v270_v47, %v279_v54  ;;  %2009 = vrcp.f32 %v285_v55  ;;  %v44_v47 = vld [vmem:[%s2392_s2 + $0x28] sm:$0xff]  ;;  %v43_v54 = vld [vmem:[%s2392_s2 + $0x20] sm:$0xff] }
 0x230   :  { %v284_v58 = vsel %vm282_vm4, %v283_v56, %v281_v57 }
 0x231   :  { %v286_v59 = vadd.f32 1e-06, %v284_v58 }
 0x233   :  { %2011 = vrcp.f32 %v286_v59 }
 0x239   :  { %v2010_v62 = vpop.eup %2009 }
 0x23a   :  { %v295_v0 = vmul.f32 %v2010_v62, %v293_v61  ;;  %v45_v61 = vld [vmem:[%s2392_s2 + $0x30] sm:$0xff]  ;;  %s2119_s2 = smov 56  }
 0x23c   :  { %v301_v2 = vadd.f32 %v1609_v63, %v295_v0 }
 0x23d   :  { %v2012_v3 = vpop.eup %2011 }
 0x23e   :  { %v296_v4 = vmul.f32 %v2012_v3, %v294_v1  ;;  %1750 = vmatprep.mubr.msk.f32.mxu1 %vm59_vm0, %v301_v2 }
 0x240   :  { %v302_v5 = vadd.f32 %v1609_v63, %v296_v4 }
 0x242   :  { %1751 = vmatmul.mubr.msk.f32.vlgmr.msra.gmra.mrb[2].mxu1 %vm59_vm0, %v302_v5 }
 0x315   :  { %v1752_v6 = vpop.f32.mrb[2].mxu1 }
 0x316   :  { %v375_v7 = vpop.f32.mrb[3].mxu1 }
 0x317   :  { %1757 = vmatprep.mubr.msk.f32.mxu1 %vm390_vm5, %v375_v7  ;;  %v2214_v8 = vpack.i.bf16 %v1752_v6, %v375_v7 }
 0x319   :  { %1971 = vrot.lane.b32.xlu1 %v2214_v8, %s2112_s20  ;;  %1966 = vrot.lane.b32.xlu0 %v2214_v8, %s2113_s21  ;;  %s2123_s20 = smov 16   ;;  %s2124_s21 = smov 24  }
 0x31d   :  { %1976 = vrot.lane.b32.xlu1 %v2214_v8, %s2114_s22  ;;  %474 = vrot.lane.b32.xlu0 %v375_v7, %s2115_s23 }
 0x321   :  { %1981 = vrot.lane.b32.xlu1 %v2214_v8, %s2116_s24  ;;  %565 = vrot.lane.b32.xlu0 %v375_v7, %s2117_s25 }
 0x325   :  { %476 = vrot.lane.b32.xlu1 %v1752_v6, %s2115_s23  ;;  %656 = vrot.lane.b32.xlu0 %v375_v7, %s2118_s26 }
 0x329   :  { %567 = vrot.lane.b32.xlu1 %v1752_v6, %s2117_s25 }
 0x32d   :  { %658 = vrot.lane.b32.xlu1 %v1752_v6, %s2118_s26 }
 0x38b   :  { %v1972_v9 = vpop.permute.xlu1 %1971  ;;  %v1967_v10 = vpop.permute.xlu0 %1966 }
 0x38c   :  { %v1974_v11 = vunpack.i.h.bf16 %v1972_v9  ;;  %v1973_v12 = vunpack.i.l.bf16 %v1972_v9  ;;  %v1969_v13 = vunpack.i.h.bf16 %v1967_v10  ;;  %v1968_v14 = vunpack.i.l.bf16 %v1967_v10 }
 0x38e   :  { %v1880_v16 = vpack.c.bf16 %v1974_v11, %v1973_v12  ;;  %v1874_v17 = vpack.c.bf16 %v1969_v13, %v1968_v14 }
 0x38f   :  { %v1977_v18 = vpop.permute.xlu1 %1976  ;;  %v475_v19 = vpop.permute.xlu0 %474 }
 0x390   :  { %v1979_v20 = vunpack.i.h.bf16 %v1977_v18  ;;  %v1978_v21 = vunpack.i.l.bf16 %v1977_v18  ;;  %1876 = vmatprep.subr.msk.bf16.mxu1 %vm2222_vm6, %v1874_v17  ;;  %1882 = vmatprep.subr.msk.bf16.mxu0 %vm2222_vm6, %v1880_v16 }
 0x391   :  { %1764 = vmatprep.mubr.msk.f32.mxu0 %vm390_vm5, %v475_v19  ;;  %1879 = vmatpush3.bf16.xpose.msk.msra.mxu1 %vm2222_vm6, %v1874_v17 }
 0x392   :  { %v1886_v22 = vpack.c.bf16 %v1979_v20, %v1978_v21  ;;  %1885 = vmatpush3.bf16.xpose.msk.msra.mxu0 %vm2222_vm6, %v1880_v16 }
 0x393   :  { %v1982_v23 = vpop.permute.xlu1 %1981  ;;  %v566_v26 = vpop.permute.xlu0 %565 }
 0x394   :  { %v1984_v27 = vunpack.i.h.bf16 %v1982_v23  ;;  %v1983_v28 = vunpack.i.l.bf16 %v1982_v23  ;;  %1888 = vmatprep.subr.msk.bf16.mxu1 %vm2222_vm6, %v1886_v22 }
 0x396   :  { %v1892_v29 = vpack.c.bf16 %v1984_v27, %v1983_v28 }
 0x397   :  { %v477_v30 = vpop.permute.xlu1 %476  ;;  %v657_v31 = vpop.permute.xlu0 %656 }
 0x398   :  { %1758 = vmatmul.mubr.msk.f32.vlgmr.msra.gmra.mrb[4].mxu1 %vm390_vm5, %v1752_v6  ;;  %1894 = vmatprep.subr.msk.bf16.mxu0 %vm2222_vm6, %v1892_v29 }
 0x399   :  { %1765 = vmatmul.mubr.msk.f32.vlgmr.msra.gmra.mrb[2].mxu0 %vm390_vm5, %v477_v30  ;;  %1891 = vmatpush3.bf16.xpose.msk.msra.mxu1 %vm2222_vm6, %v1886_v22 }
 0x39a   :  { %1771 = vmatprep.mubr.msk.f32.mxu1 %vm390_vm5, %v566_v26  ;;  %1897 = vmatpush3.bf16.xpose.msk.msra.mxu0 %vm2222_vm6, %v1892_v29 }
 0x39b   :  { %1778 = vmatprep.mubr.msk.f32.mxu0 %vm390_vm5, %v657_v31  ;;  %v568_v32 = vpop.permute.xlu1 %567 }
 0x39f   :  { %v659_v33 = vpop.permute.xlu1 %658 }
 0x3a0   :  { %1772 = vmatmul.mubr.msk.f32.vlgmr.msra.gmra.mrb[6].mxu1 %vm390_vm5, %v568_v32 }
 0x3a1   :  { %1779 = vmatmul.mubr.msk.f32.vlgmr.msra.gmra.mrb[4].mxu0 %vm390_vm5, %v659_v33 }
 0x46b   :  { %v1759_v36 = vpop.f32.mrb[4].mxu1 }
 0x46c   :  { %v748_v37 = vadd.f32 %v1759_v36, %v40_v34  ;;  %v1766_v38 = vpop.f32.mrb[2].mxu0  ;;  %v465_v40 = vpop.f32.mrb[5].mxu1 }
 0x46d   :  { %v750_v41 = vadd.f32 %v1766_v38, %v42_v35  ;;  %v556_v42 = vpop.f32.mrb[3].mxu0  ;;  %v747_v44 = vadd.f32 %v465_v40, %v39_v39 }
 0x46e   :  { %v759_v43 = vsel %vm755_vm7, %v748_v37, -inf  ;;  %v749_v48 = vadd.f32 %v556_v42, %v41_v46 }
 0x46f   :  { %v765_v45 = vsel %vm755_vm7, %v750_v41, -inf  ;;  %760 = vmax.xlane.f32.xlu1 %v759_v43  ;;  %v756_v50 = vsel %vm755_vm7, %v747_v44, -inf }
 0x470   :  { %766 = vmax.xlane.f32.xlu0 %v765_v45  ;;  %v762_v60 = vsel %vm755_vm7, %v749_v48, -inf }
 0x473   :  { %v1773_v51 = vpop.f32.mrb[6].mxu1 }
 0x474   :  { %v1780_v52 = vpop.f32.mrb[4].mxu0  ;;  %757 = vmax.xlane.f32.xlu0 %v756_v50  ;;  %v752_v53 = vadd.f32 %v1773_v51, %v44_v47  ;;  %v647_v55 = vpop.f32.mrb[7].mxu1 }
 0x475   :  { %v738_v56 = vpop.f32.mrb[5].mxu0  ;;  %v754_v57 = vadd.f32 %v1780_v52, %v46_v49  ;;  %v751_v59 = vadd.f32 %v647_v55, %v43_v54 }
 0x476   :  { %v771_v58 = vsel %vm755_vm7, %v752_v53, -inf  ;;  %v753_v63 = vadd.f32 %v738_v56, %v45_v61 }
 0x477   :  { %772 = vmax.xlane.f32.xlu1 %v771_v58  ;;  %v777_v62 = vsel %vm755_vm7, %v754_v57, -inf  ;;  %v768_v0 = vsel %vm755_vm7, %v751_v59, -inf }
 0x478   :  { %763 = vmax.xlane.f32.xlu0 %v762_v60  ;;  %v774_v1 = vsel %vm755_vm7, %v753_v63, -inf }
 0x47b   :  { %778 = vmax.xlane.f32.xlu1 %v777_v62 }
 0x47c   :  { %769 = vmax.xlane.f32.xlu0 %v768_v0 }
 0x480   :  { %775 = vmax.xlane.f32.xlu0 %v774_v1 }
 0x4fc   :  { %v761_v2 = vpop.xlane.xlu1 %760 }
 0x4fd   :  { %v767_v3 = vpop.xlane.xlu0 %766  ;;  %v781_v4 = vsub.f32 %v748_v37, %v761_v2 }
 0x4fe   :  { %v783_v5 = vsub.f32 %v750_v41, %v767_v3 }
 0x4ff   :  { %v790_v6 = vmul.f32 1.442695, %v781_v4 }
 0x500   :  { %v794_v7 = vmul.f32 1.442695, %v783_v5 }
 0x501   :  { %2013 = vpow2.f32 %v790_v6  ;;  %v758_v9 = vpop.xlane.xlu0 %757 }
 0x502   :  { %v780_v10 = vsub.f32 %v747_v44, %v758_v9  ;;  %2015 = vpow2.f32 %v794_v7 }
 0x504   :  { %v788_v11 = vmul.f32 1.442695, %v780_v10  ;;  %v773_v12 = vpop.xlane.xlu1 %772 }
 0x505   :  { %v764_v13 = vpop.xlane.xlu0 %763  ;;  %v785_v14 = vsub.f32 %v752_v53, %v773_v12 }
 0x506   :  { %2017 = vpow2.f32 %v788_v11  ;;  %v782_v15 = vsub.f32 %v749_v48, %v764_v13 }
 0x507   :  { %v798_v16 = vmul.f32 1.442695, %v785_v14 }
 0x508   :  { %v792_v17 = vmul.f32 1.442695, %v782_v15  ;;  %v779_v18 = vpop.xlane.xlu1 %778 }
 0x509   :  { %2019 = vpow2.f32 %v798_v16  ;;  %v787_v19 = vsub.f32 %v754_v57, %v779_v18  ;;  %v770_v20 = vpop.xlane.xlu0 %769 }
 0x50a   :  { %2021 = vpow2.f32 %v792_v17  ;;  %v784_v21 = vsub.f32 %v751_v59, %v770_v20 }
 0x50b   :  { %v2281_v22 = vpop.eup %2013  ;;  %v802_v23 = vmul.f32 1.442695, %v787_v19 }
 0x50c   :  { %v796_v26 = vmul.f32 1.442695, %v784_v21  ;;  %v807_v27 = vsel %vm755_vm7, %v2281_v22, 0.0  ;;  %v2285_v28 = vpop.eup %2015  ;;  %v228_v21 = vld [vmem:[#allocation2 + $0x60] sm:$0xff] }
 0x50d   :  { %2023 = vpow2.f32 %v802_v23  ;;  %v776_v29 = vpop.xlane.xlu0 %775  ;;  %808 = vadd.xlane.f32.xlu1 %v807_v27  ;;  %v813_v33 = vsel %vm755_vm7, %v2285_v28, 0.0  ;;  %v231_v27 = vld [vmem:[#allocation2 + $0x78] sm:$0xff] }
 0x50e   :  { %2025 = vpow2.f32 %v796_v26  ;;  %v786_v30 = vsub.f32 %v753_v63, %v776_v29  ;;  %v230_v26 = vld [vmem:[#allocation2 + $0x70] sm:$0xff] }
 0x510   :  { %v2018_v31 = vpop.eup %2017  ;;  %v800_v32 = vmul.f32 1.442695, %v786_v30 }
 0x511   :  { %814 = vadd.xlane.f32.xlu1 %v813_v33  ;;  %v804_v34 = vsel %vm755_vm7, %v2018_v31, 0.0 }
 0x512   :  { %2027 = vpow2.f32 %v800_v32  ;;  %805 = vadd.xlane.f32.xlu0 %v804_v34 }
 0x513   :  { %v2290_v35 = vpop.eup %2019 }
 0x514   :  { %v2292_v36 = vpop.eup %2021  ;;  %v819_v37 = vsel %vm755_vm7, %v2290_v35, 0.0 }
 0x515   :  { %820 = vadd.xlane.f32.xlu1 %v819_v37  ;;  %v810_v38 = vsel %vm755_vm7, %v2292_v36, 0.0 }
 0x516   :  { %811 = vadd.xlane.f32.xlu0 %v810_v38 }
 0x517   :  { %v2298_v39 = vpop.eup %2023 }
 0x518   :  { %v2026_v40 = vpop.eup %2025  ;;  %v825_v41 = vsel %vm755_vm7, %v2298_v39, 0.0 }
 0x519   :  { %826 = vadd.xlane.f32.xlu1 %v825_v41  ;;  %v816_v42 = vsel %vm755_vm7, %v2026_v40, 0.0 }
 0x51a   :  { %817 = vadd.xlane.f32.xlu0 %v816_v42 }
 0x51c   :  { %v2303_v43 = vpop.eup %2027 }
 0x51d   :  { %v822_v44 = vsel %vm755_vm7, %v2303_v43, 0.0 }
 0x51e   :  { %823 = vadd.xlane.f32.xlu0 %v822_v44 }
 0x52a   :  { %1991 = vrot.lane.b32.xlu1 %v2214_v8, %s2119_s2 }
 0x52e   :  { %1996 = vrot.lane.b32.xlu1 %v2214_v8, %s2120_s17 }
 0x532   :  { %2001 = vrot.lane.b32.xlu1 %v2214_v8, %s2121_s18 }
 0x534   :  { %1986 = vrot.lane.b32.xlu0 %v2214_v8, %s2122_s19 }
 0x59a   :  { %v809_v45 = vpop.xlane.xlu1 %808 }
 0x59e   :  { %v815_v46 = vpop.xlane.xlu1 %814 }
 0x59f   :  { %v806_v47 = vpop.xlane.xlu0 %805 }
 0x5a0   :  { %2029 = vrcp.f32 %v806_v47 }
 0x5a2   :  { %v821_v48 = vpop.xlane.xlu1 %820 }
 0x5a3   :  { %v812_v49 = vpop.xlane.xlu0 %811  ;;  %2031 = vrcp.f32 %v821_v48 }
 0x5a6   :  { %v827_v50 = vpop.xlane.xlu1 %826 }
 0x5a7   :  { %v818_v51 = vpop.xlane.xlu0 %817 }
 0x5a8   :  { %2033 = vrcp.f32 %v818_v51 }
 0x5a9   :  { %2035 = vrcp.f32 %v809_v45 }
 0x5aa   :  { %v2030_v52 = vpop.eup %2029  ;;  %2037 = vrcp.f32 %v812_v49  ;;  %v1992_v53 = vpop.permute.xlu1 %1991 }
 0x5ab   :  { %v824_v54 = vpop.xlane.xlu0 %823  ;;  %v836_v55 = vmul.f32 %v2030_v52, %v2018_v31  ;;  %2039 = vrcp.f32 %v815_v46  ;;  %v1994_v59 = vunpack.i.h.bf16 %v1992_v53  ;;  %v1993_v60 = vunpack.i.l.bf16 %v1992_v53 }
 0x5ac   :  { %2041 = vrcp.f32 %v824_v54 }
 0x5ad   :  { %1785 = vmatprep.mubr.msk.f32.mxu1 %vm755_vm7, %v836_v55  ;;  %v2032_v63 = vpop.eup %2031  ;;  %2043 = vrcp.f32 %v827_v50  ;;  %v1902_v7 = vpack.c.bf16 %v1994_v59, %v1993_v60 }
 0x5ae   :  { %v1997_v8 = vpop.permute.xlu1 %1996  ;;  %v841_v11 = vmul.f32 %v2032_v63, %v2290_v35  ;;  %v233_v63 = vld [vmem:[#allocation2 + $0x88] sm:$0xff] }
 0x5af   :  { %v1999_v56 = vunpack.i.h.bf16 %v1997_v8  ;;  %v1998_v57 = vunpack.i.l.bf16 %v1997_v8  ;;  %v1987_v58 = vpop.permute.xlu0 %1986 }
 0x5b0   :  { %v1989_v61 = vunpack.i.h.bf16 %v1987_v58  ;;  %v1988_v62 = vunpack.i.l.bf16 %v1987_v58 }
 0x5b1   :  { %v1906_v0 = vpack.c.bf16 %v1999_v56, %v1998_v57 }
 0x5b2   :  { %v2034_v1 = vpop.eup %2033  ;;  %v1898_v2 = vpack.c.bf16 %v1989_v61, %v1988_v62  ;;  %v2002_v3 = vpop.permute.xlu1 %2001  ;;  %v232_v62 = vld [vmem:[#allocation2 + $0x80] sm:$0xff] }
 0x5b3   :  { %v2036_v4 = vpop.eup %2035  ;;  %1907 = vmatprep.subr.bf16.mxu0 %v1906_v0  ;;  %v840_v5 = vmul.f32 %v2034_v1, %v2026_v40  ;;  %v2004_v9 = vunpack.i.h.bf16 %v2002_v3  ;;  %v2003_v10 = vunpack.i.l.bf16 %v2002_v3  ;;  %v1922_v1 = vpack.c.bf16 %v233_v63, %v232_v62 }
 0x5b4   :  { %v2038_v6 = vpop.eup %2037  ;;  %1899 = vmatprep.subr.bf16.mxu1 %v1898_v2  ;;  %1909 = vmatpush3.bf16.msra.mxu0 %v1906_v0  ;;  %v837_v12 = vmul.f32 %v2036_v4, %v2281_v22  ;;  %v229_v22 = vld [vmem:[#allocation2 + $0x68] sm:$0xff]  ;;  %v234_v0 = vld [vmem:[#allocation2 + $0x90] sm:$0xff]  ;;  %v236_v4 = vld [vmem:[#allocation2 + $0xa0] sm:$0xff] }
 0x5b5   :  { %1901 = vmatpush3.bf16.msra.mxu1 %v1898_v2  ;;  %1799 = vmatprep.mubr.msk.f32.mxu0 %vm755_vm7, %v840_v5  ;;  %v2040_v13 = vpop.eup %2039  ;;  %v838_v14 = vmul.f32 %v2038_v6, %v2292_v36  ;;  %v1910_v16 = vpack.c.bf16 %v2004_v9, %v2003_v10  ;;  %v1914_v23 = vpack.c.bf16 %v229_v22, %v228_v21  ;;  %v235_v2 = vld [vmem:[#allocation2 + $0x98] sm:$0xff]  ;;  %v237_v5 = vld [vmem:[#allocation2 + $0xa8] sm:$0xff]  ;;  %v238_v6 = vld [vmem:[#allocation2 + $0xb0] sm:$0xff] }
 0x5b6   :  { %1903 = vmatprep.subr.bf16.mxu1 %v1902_v7  ;;  %v2042_v15 = vpop.eup %2041  ;;  %v839_v17 = vmul.f32 %v2040_v13, %v2285_v28  ;;  %v1918_v28 = vpack.c.bf16 %v231_v27, %v230_v26  ;;  %v1926_v3 = vpack.c.bf16 %v235_v2, %v234_v0  ;;  %v239_v9 = vld [vmem:[#allocation2 + $0xb8] sm:$0xff] }
 0x5b7   :  { %1800 = vmatmul.mubr.msk.f32.vlgmr.msra.gmra.mrb[6].mxu0 %vm755_vm7, %v841_v11  ;;  %v2044_v18 = vpop.eup %2043  ;;  %v842_v19 = vmul.f32 %v2042_v15, %v2303_v43  ;;  %1915 = vmatprep.subr.bf16.mxu0 %v1914_v23  ;;  %v1934_v10 = vpack.c.bf16 %v239_v9, %v238_v6  ;;  %v240_v11 = vld [vmem:[#allocation2 + $0xc0] sm:$0xff] }
 0x5b8   :  { %1786 = vmatmul.mubr.msk.f32.vlgmr.msra.gmra.mrb[8].mxu1 %vm755_vm7, %v837_v12  ;;  %v843_v20 = vmul.f32 %v2044_v18, %v2298_v39  ;;  %1917 = vmatpush3.bf16.msra.mxu0 %v1914_v23  ;;  %v241_v12 = vld [vmem:[#allocation2 + $0xc8] sm:$0xff] }
 0x5b9   :  { %1905 = vmatpush3.bf16.msra.mxu1 %v1902_v7  ;;  %1792 = vmatprep.mubr.msk.f32.mxu1 %vm755_vm7, %v838_v14  ;;  %v1930_v7 = vpack.c.bf16 %v237_v5, %v236_v4  ;;  %v1938_v13 = vpack.c.bf16 %v241_v12, %v240_v11 }
 0x5ba   :  { %1911 = vmatprep.subr.bf16.mxu1 %v1910_v16  ;;  %1919 = vmatprep.subr.bf16.mxu0 %v1918_v28 }
 0x5bc   :  { %1793 = vmatmul.mubr.msk.f32.vlgmr.msra.gmra.mrb[10].mxu1 %vm755_vm7, %v839_v17  ;;  %1921 = vmatpush3.bf16.msra.mxu0 %v1918_v28 }
 0x5bd   :  { %1913 = vmatpush3.bf16.msra.mxu1 %v1910_v16  ;;  %1806 = vmatprep.mubr.msk.f32.mxu1 %vm755_vm7, %v842_v19 }
 0x5be   :  { %1923 = vmatprep.subr.bf16.mxu1 %v1922_v1  ;;  %1931 = vmatprep.subr.bf16.mxu0 %v1930_v7 }
 0x5c0   :  { %1807 = vmatmul.mubr.msk.f32.vlgmr.msra.gmra.mrb[12].mxu1 %vm755_vm7, %v843_v20 }
 0x5c1   :  { %1925 = vmatpush3.bf16.msra.mxu1 %v1922_v1 }
 0x5c2   :  { %1927 = vmatprep.subr.bf16.mxu1 %v1926_v3 }
 0x5c5   :  { %1929 = vmatpush3.bf16.msra.mxu1 %v1926_v3 }
 0x68a   :  { %v1801_v29 = vpop.f32.mrb[6].mxu0 }
 0x68b   :  { %v1787_v30 = vpop.f32.mrb[8].mxu1  ;;  %v1096_v31 = vpop.f32.mrb[7].mxu0 }
 0x68c   :  { %v922_v32 = vpop.f32.mrb[9].mxu1 }
 0x68f   :  { %v1794_v33 = vpop.f32.mrb[10].mxu1 }
 0x690   :  { %1196 = vrot.lane.b32.xlu1 %v1794_v33, %s2111_s29  ;;  %v1009_v34 = vpop.f32.mrb[11].mxu1 }
 0x691   :  { %1194 = vrot.lane.b32.xlu0 %v1009_v34, %s2111_s29 }
 0x693   :  { %v1808_v35 = vpop.f32.mrb[12].mxu1 }
 0x694   :  { %1204 = vrot.lane.b32.xlu1 %v1801_v29, %s2123_s20  ;;  %v1183_v36 = vpop.f32.mrb[13].mxu1 }
 0x695   :  { %1202 = vrot.lane.b32.xlu0 %v1096_v31, %s2123_s20 }
 0x698   :  { %1212 = vrot.lane.b32.xlu1 %v1808_v35, %s2124_s21  ;;  %v1639_v35 = vld [vmem:[%s2394_s4 + $0x1b] ss:$0 sm:$0xff] }
 0x699   :  { %1210 = vrot.lane.b32.xlu0 %v1183_v36, %s2124_s21 }
 0x702   :  { %v1197_v37 = vpop.permute.xlu1 %1196 }
 0x703   :  { %v1195_v38 = vpop.permute.xlu0 %1194  ;;  %v1217_v43 = vsel %vm390_vm5, %v1787_v30, %v1197_v37 }
 0x704   :  { %v1216_v41 = vsel %vm390_vm5, %v922_v32, %v1195_v38  ;;  %v1638_v32 = vld [vmem:[%s2394_s4 + $0x1a] ss:$0 sm:$0xff] }
 0x706   :  { %v1205_v39 = vpop.permute.xlu1 %1204 }
 0x707   :  { %v1203_v40 = vpop.permute.xlu0 %1202  ;;  %v1219_v46 = vsel %vm755_vm7, %v1217_v43, %v1205_v39  ;;  %v243_v43 = vld [vmem:[#allocation2 + $0xd8] sm:$0xff] }
 0x708   :  { %v1218_v44 = vsel %vm755_vm7, %v1216_v41, %v1203_v40 }
 0x70a   :  { %v1213_v42 = vpop.permute.xlu1 %1212 }
 0x70b   :  { %v1211_v45 = vpop.permute.xlu0 %1210  ;;  %v1222_v48 = vsel %vm1220_vm8, %v1219_v46, %v1213_v42  ;;  %v242_v42 = vld [vmem:[#allocation2 + $0xd0] sm:$0xff] }
 0x70c   :  { %v1221_v47 = vsel %vm1220_vm8, %v1218_v44, %v1211_v45  ;;  %v1942_v44 = vpack.c.bf16 %v243_v43, %v242_v42  ;;  %v1640_v45 = vld [vmem:[%s2394_s4 + $0x1d] ss:$0 sm:$0xff] }
 0x70d   :  { %1817 = vmatprep.mubr.msk.f32.mxu0 %vm59_vm0, %v1221_v47 }
 0x70e   :  { %1818 = vmatmul.mubr.msk.f32.vlgmr.msra.gmra.mrb[8].mxu0 %vm59_vm0, %v1222_v48 }
 0x70f   :  { %1933 = vmatpush3.bf16.msra.mxu0 %v1930_v7 }
 0x710   :  { %1935 = vmatprep.subr.bf16.mxu0 %v1934_v10 }
 0x713   :  { %1937 = vmatpush3.bf16.msra.mxu0 %v1934_v10 }
 0x714   :  { %1939 = vmatprep.subr.bf16.mxu0 %v1938_v13 }
 0x717   :  { %1941 = vmatpush3.bf16.msra.mxu0 %v1938_v13 }
 0x718   :  { %1943 = vmatprep.subr.bf16.mxu0 %v1942_v44 }
 0x71b   :  { %1945 = vmatpush3.bf16.msra.mxu0 %v1942_v44 }
 0x7e1   :  { %v1819_v49 = vpop.f32.mrb[8].mxu0 }
 0x7e2   :  { %v2334_v50 = vadd.f32 %v1819_v49, %v2195_v25  ;;  %v1295_v51 = vpop.f32.mrb[9].mxu0 }
 0x7e3   :  { %v2337_v52 = vadd.f32 %v1295_v51, %v2193_v24 }
 0x7e4   :  { %v1309_v53 = vsel %vm59_vm0, %v2334_v50, 0.0 }
 0x7e5   :  { %1310 = vadd.xlane.f32.xlu1 %v1309_v53  ;;  %v1306_v54 = vsel %vm59_vm0, %v2337_v52, 0.0 }
 0x7e6   :  { %1307 = vadd.xlane.f32.xlu0 %v1306_v54  ;;  %v1643_v54 = vld [vmem:[%s2394_s4 + $0x1c] ss:$0 sm:$0xff] }
 0x872   :  { %v1311_v55 = vpop.xlane.xlu1 %1310 }
 0x873   :  { %v1313_v8 = vmul.f32 0.03125, %v1311_v55  ;;  %v1308_v56 = vpop.xlane.xlu0 %1307 }
 0x874   :  { %v1312_v57 = vmul.f32 0.03125, %v1308_v56 }
 0x875   :  { %v1315_v58 = vsub.f32 %v2334_v50, %v1313_v8 }
 0x876   :  { %v1314_v25 = vsub.f32 %v2337_v52, %v1312_v57 }
 0x877   :  { %v1317_v60 = vmul.f32 %v1315_v58, %v1315_v58  ;;  %v1349_v37 = vmul.f32 %v1638_v32, %v1315_v58 }
 0x878   :  { %v1316_v59 = vmul.f32 %v1314_v25, %v1314_v25  ;;  %v1348_v33 = vmul.f32 %v1638_v32, %v1314_v25 }
 0x879   :  { %v1321_v61 = vsel %vm59_vm0, %v1317_v60, 0.0 }
 0x87a   :  { %v1318_v24 = vsel %vm59_vm0, %v1316_v59, 0.0 }
 0x87b   :  { %1319 = vadd.xlane.f32.xlu0 %v1318_v24 }
 0x87f   :  { %1322 = vadd.xlane.f32.xlu0 %v1321_v61 }
 0x908   :  { %v1320_v14 = vpop.xlane.xlu0 %1319 }
 0x909   :  { %v1324_v15 = vmul.f32 0.032258064, %v1320_v14 }
 0x90b   :  { %2045 = vrsqrt.f32 %v1324_v15  ;;  %vm1328_vm9 = vcmp.eq.f32.partialorder %v1324_v15, inf  ;;  %v1331_v20 = vand.u32 2147483648, %v1324_v15  ;;  %vm1330_vm10 = vcmp.eq.f32.partialorder %v1324_v15, 0.0 }
 0x90c   :  { %v1323_v16 = vpop.xlane.xlu0 %1322 }
 0x90d   :  { %v1325_v17 = vmul.f32 0.032258064, %v1323_v16 }
 0x90f   :  { %2047 = vrsqrt.f32 %v1325_v17  ;;  %vm1335_vm11 = vcmp.eq.f32.partialorder %v1325_v17, inf  ;;  %v1338_v28 = vand.u32 2147483648, %v1325_v17  ;;  %vm1337_vm12 = vcmp.eq.f32.partialorder %v1325_v17, 0.0 }
 0x915   :  { %v2046_v18 = vpop.eup %2045 }
 0x916   :  { %v1327_v19 = vmul.f32 %v2046_v18, %v1324_v15 }
 0x918   :  { %v1329_v21 = vsel %vm1328_vm9, %v1324_v15, %v1327_v19 }
 0x919   :  { %v2048_v22 = vpop.eup %2047  ;;  %v1332_v23 = vsel %vm1330_vm10, %v1331_v20, %v1329_v21  ;;  %v1646_v21 = vld [vmem:[%s2394_s4 + $0x10] ss:$0 sm:$0xff] }
 0x91a   :  { %v1334_v26 = vmul.f32 %v2048_v22, %v1325_v17  ;;  %v1340_v27 = vadd.f32 1e-06, %v1332_v23 }
 0x91c   :  { %v1336_v29 = vsel %vm1335_vm11, %v1325_v17, %v1334_v26  ;;  %2049 = vrcp.f32 %v1340_v27  ;;  %v1647_v27 = vld [vmem:[%s2394_s4 + $0x11] ss:$0 sm:$0xff] }
 0x91d   :  { %v1339_v30 = vsel %vm1337_vm12, %v1338_v28, %v1336_v29 }
 0x91e   :  { %v1341_v31 = vadd.f32 1e-06, %v1339_v30 }
 0x920   :  { %2051 = vrcp.f32 %v1341_v31 }
 0x926   :  { %v2050_v34 = vpop.eup %2049 }
 0x927   :  { %v1350_v36 = vmul.f32 %v2050_v34, %v1348_v33 }
 0x929   :  { %v1356_v38 = vadd.f32 %v1639_v35, %v1350_v36 }
 0x92a   :  { %v2052_v39 = vpop.eup %2051 }
 0x92b   :  { %v1351_v40 = vmul.f32 %v2052_v39, %v1349_v37  ;;  %1828 = vmatprep.mubr.msk.f32.mxu1 %vm59_vm0, %v1356_v38 }
 0x92d   :  { %v1357_v41 = vadd.f32 %v1639_v35, %v1351_v40 }
 0x92f   :  { %1829 = vmatmul.mubr.msk.f32.vlgmr.msra.gmra.mrb[14].mxu1 %vm59_vm0, %v1357_v41 }
 0xa02   :  { %v1830_v46 = vpop.f32.mrb[14].mxu1 }
 0xa03   :  { %v1440_v47 = vadd.f32 %v1830_v46, %v1640_v45  ;;  %v1434_v48 = vpop.f32.mrb[15].mxu1 }
 0xa04   :  { %v1435_v49 = vadd.f32 %v1640_v45, %v1434_v48 }
 0xa05   :  { %v1444_v53 = vmax.f32 %v1440_v47, 0.0 }
 0xa06   :  { %v1443_v51 = vmax.f32 %v1435_v49, 0.0 }
 0xa08   :  { %1847 = vmatprep.mubr.msk.f32.mxu0 %vm1449_vm13, %v1443_v51 }
 0xa09   :  { %1848 = vmatmul.mubr.msk.f32.vlgmr.msra.gmra.mrb[10].mxu0 %vm1449_vm13, %v1444_v53 }
 0xadc   :  { %v1849_v55 = vpop.f32.mrb[10].mxu0 }
 0xadd   :  { %v1528_v8 = vadd.f32 %v1849_v55, %v1643_v54  ;;  %v1522_v56 = vpop.f32.mrb[11].mxu0 }
 0xade   :  { %v1523_v57 = vadd.f32 %v1643_v54, %v1522_v56 }
 0xadf   :  { %v1532_v58 = vadd.f32 %v1528_v8, %v2334_v50 }
 0xae0   :  { %v1531_v25 = vadd.f32 %v1523_v57, %v2337_v52 }
 0xae1   :  { %v1536_v59 = vsel %vm59_vm0, %v1532_v58, 0.0 }
 0xae2   :  { %1537 = vadd.xlane.f32.xlu1 %v1536_v59  ;;  %v1533_v24 = vsel %vm59_vm0, %v1531_v25, 0.0 }
 0xae3   :  { %1534 = vadd.xlane.f32.xlu0 %v1533_v24 }
 0xb6f   :  { %v1538_v60 = vpop.xlane.xlu1 %1537 }
 0xb70   :  { %v1540_v61 = vmul.f32 0.03125, %v1538_v60  ;;  %v1535_v62 = vpop.xlane.xlu0 %1534 }
 0xb71   :  { %v1539_v63 = vmul.f32 0.03125, %v1535_v62 }
 0xb72   :  { %v1542_v0 = vsub.f32 %v1532_v58, %v1540_v61 }
 0xb73   :  { %v1541_v1 = vsub.f32 %v1531_v25, %v1539_v63 }
 0xb74   :  { %v1544_v2 = vmul.f32 %v1542_v0, %v1542_v0  ;;  %v1576_v22 = vmul.f32 %v1646_v21, %v1542_v0 }
 0xb75   :  { %v1543_v3 = vmul.f32 %v1541_v1, %v1541_v1  ;;  %v1575_v26 = vmul.f32 %v1646_v21, %v1541_v1 }
 0xb76   :  { %v1548_v4 = vsel %vm59_vm0, %v1544_v2, 0.0 }
 0xb77   :  { %1549 = vadd.xlane.f32.xlu1 %v1548_v4  ;;  %v1545_v50 = vsel %vm59_vm0, %v1543_v3, 0.0 }
 0xb78   :  { %1546 = vadd.xlane.f32.xlu0 %v1545_v50 }
 0xc04   :  { %v1550_v52 = vpop.xlane.xlu1 %1549 }
 0xc05   :  { %v1552_v5 = vmul.f32 0.032258064, %v1550_v52  ;;  %v1547_v6 = vpop.xlane.xlu0 %1546 }
 0xc06   :  { %v1551_v7 = vmul.f32 0.032258064, %v1547_v6 }
 0xc07   :  { %2053 = vrsqrt.f32 %v1552_v5  ;;  %vm1562_vm14 = vcmp.eq.f32.partialorder %v1552_v5, inf  ;;  %v1565_v12 = vand.u32 2147483648, %v1552_v5  ;;  %vm1564_vm15 = vcmp.eq.f32.partialorder %v1552_v5, 0.0 }
 0xc08   :  { %2055 = vrsqrt.f32 %v1551_v7  ;;  %vm1555_vm1 = vcmp.eq.f32.partialorder %v1551_v7, inf  ;;  %v1558_v15 = vand.u32 2147483648, %v1551_v7  ;;  %vm1557_vm2 = vcmp.eq.f32.partialorder %v1551_v7, 0.0 }
 0xc11   :  { %v2054_v9 = vpop.eup %2053 }
 0xc12   :  { %v2056_v10 = vpop.eup %2055  ;;  %v1561_v11 = vmul.f32 %v2054_v9, %v1552_v5 }
 0xc13   :  { %v1554_v13 = vmul.f32 %v2056_v10, %v1551_v7 }
 0xc14   :  { %v1563_v14 = vsel %vm1562_vm14, %v1552_v5, %v1561_v11 }
 0xc15   :  { %v1566_v16 = vsel %vm1564_vm15, %v1565_v12, %v1563_v14  ;;  %v1556_v17 = vsel %vm1555_vm1, %v1551_v7, %v1554_v13 }
 0xc16   :  { %v1568_v18 = vadd.f32 1e-06, %v1566_v16  ;;  %v1559_v19 = vsel %vm1557_vm2, %v1558_v15, %v1556_v17 }
 0xc17   :  { %v1567_v20 = vadd.f32 1e-06, %v1559_v19 }
 0xc18   :  { %2057 = vrcp.f32 %v1568_v18 }
 0xc19   :  { %2059 = vrcp.f32 %v1567_v20 }
 0xc22   :  { %v2058_v23 = vpop.eup %2057 }
 0xc23   :  { %v2060_v28 = vpop.eup %2059  ;;  %v1578_v29 = vmul.f32 %v2058_v23, %v1576_v22 }
 0xc24   :  { %v1577_v30 = vmul.f32 %v2060_v28, %v1575_v26 }
 0xc25   :  { %v1584_v31 = vadd.f32 %v1647_v27, %v1578_v29 }
 0xc26   :  { %v1583_v32 = vadd.f32 %v1647_v27, %v1577_v30 }
 0xc27   :  { %1586 = vst.msk [vmem:[#allocation5 + $0x8] sm:$0xff] %vm59_vm0, %v1584_v31 }
 0xc28   :  { %1585 = vst.msk [vmem:[#allocation5] sm:$0xff] %vm59_vm0, %v1583_v32 }
 0xc29   :  { %2094 = shalt.err (!%p2091_p12)
}
 0xc2a   :  { %s2095_s14 = scalar_lea.hbm %s2395_s5, 256 }
 0xc2b   :  { %p2096_p13 = scmp.ne.s32.totalorder %s2395_s5, %s2095_s14  ;;  %p2099_p0 = scmp.lt.u32.totalorder %s2095_s14, %s2395_s5 }
 0xc2d   :  { %p2101_p1 = pnand %p2099_p0, %p2096_p13 }
 0xc2f   :  { %2104 = shalt.err (!%p2101_p1)
}
 0xc30   :  { %1598 = dma.vmem_to_hbm [thread:$0]  %s1593_s11, 256, %s2395_s5, [#allocation4], %s2110_s28, %s2110_s28, %s2111_s29  }
 0xc31   :  { %2107 = dma.done.wait [#allocation4], 256  }
 0xc32   :  { %2108 = vsyncadd [#allocation4], 4294967040 }
 0xc33   :  { %1602 = vsyncpa [#allocation3], 1 }
 0xc34   :  { %1603 = vsyncpa [#allocation4], 1 }

</bundles_post_ra>
